<compile_context>
chip_gen: v6e
topology: v6e:2x2x1
jax: 0.10.0
libtpu: 0.0.40
codegen_flags: <defaults>
</compile_context>

<pallas_src>
import functools

import jax
import jax.numpy as jnp
from jax.experimental import pallas as pl
from jax.experimental.pallas import tpu as pltpu

# ----------------------------- config (synthetic) -----------------------------
IN_FEATURES = 1          # per-feature NN takes a single scalar feature
NUM_UNITS = 32           # config.num_units
NUM_LAYERS = 3           # config.num_layers
ACTIVATION = "relu"      # config.activation_cls
MAX_BATCH_TILE = 1024    # lane-axis batch tile (multiple of 128)


def _round_up(n, m):
    return ((n + m - 1) // m) * m


def _activation(h):
    if ACTIVATION == "relu":
        return jnp.maximum(h, 0.0)
    if ACTIVATION == "gelu":
        return jax.nn.gelu(h)
    if ACTIVATION == "elu":
        return jnp.where(h > 0, h, jnp.expm1(h))
    if ACTIVATION == "leakyrelu":
        return jnp.where(h > 0, h, 0.01 * h)
    raise ValueError(ACTIVATION)


# ------------------------------- Pallas kernel --------------------------------
def featurenn_kernel(x_ref, vecs_ref, w2_ref, w3_ref, out_ref):
    """Full MLP forward for one batch tile, transposed layout (units, batch).

    x_ref:    (1, TB)   f32   batch on the lane axis
    vecs_ref: (32, 8)   f32   cols: [w1, b1, b2, b3, wo, bo, 0, 0]
    w2_ref:   (32, 32)  f32   torch layout (out_f, in_f)
    w3_ref:   (32, 32)  f32   torch layout (out_f, in_f)
    out_ref:  (1, TB)   f32   lane-dense output slab
    """
    x = x_ref[...]                               # (1, TB)
    vecs = vecs_ref[...]                         # (32, 8)
    w1 = vecs[:, 0:1]                            # (32, 1)
    b1 = vecs[:, 1:2]
    b2 = vecs[:, 2:3]
    b3 = vecs[:, 3:4]
    wo = vecs[:, 4:5]
    bo = vecs[0:1, 5:6]                          # (1, 1)

    # Layer 1 (in_features=1): outer product on the VPU instead of a K=1 matmul.
    h = _activation(w1 * x + b1)                 # (32, TB)

    # Hidden layers: (32,32) @ (32,TB) on the MXU, batch fills the lane width.
    h = _activation(
        jnp.dot(w2_ref[...], h, preferred_element_type=jnp.float32) + b2)
    h = _activation(
        jnp.dot(w3_ref[...], h, preferred_element_type=jnp.float32) + b3)

    # Output layer (out_features=1): multiply + sublane reduction (VPU + XLU),
    # result is already the lane-dense (1, TB) row we want to store.
    out = jnp.sum(wo * h, axis=0, keepdims=True) + bo
    out_ref[...] = out.astype(out_ref.dtype)


# --------------------------------- wrapper ------------------------------------
@functools.partial(jax.jit, static_argnames=())
def featurenn_forward(x, params):
    """x: (batch,) or (batch, in_features). Returns (batch, 1)."""
    if x.ndim == 1:
        x = x[:, None]                           # == inputs.unsqueeze(1)
    b, f = x.shape
    assert f == IN_FEATURES == 1

    (w1, b1), (w2, b2), (w3, b3), (wo, bo) = params

    # Batch tile: lane-dense (multiple of 128), capped at MAX_BATCH_TILE.
    bt = min(MAX_BATCH_TILE, _round_up(b, 128))
    bp = _round_up(b, bt)
    n_tiles = bp // bt

    # Batch onto the lane axis: (1, bp). Padded lanes compute garbage that is
    # sliced off before return (no NaN leakage into real lanes).
    xt = x[:, 0][None, :]
    if bp != b:
        xt = jnp.pad(xt, ((0, 0), (0, bp - b)))

    # Pack all small vectors into one (32, 8) array (done once per call,
    # negligible wrapper-side work).
    vecs = jnp.stack(
        [
            w1[:, 0],                                   # layer-1 weights (32,)
            b1,                                         # layer-1 bias
            b2,                                         # layer-2 bias
            b3,                                         # layer-3 bias
            wo[0, :],                                   # output weights (32,)
            jnp.full((NUM_UNITS,), bo[0], jnp.float32), # output bias (broadcast)
            jnp.zeros((NUM_UNITS,), jnp.float32),
            jnp.zeros((NUM_UNITS,), jnp.float32),
        ],
        axis=1,
    ).astype(jnp.float32)                               # (32, 8)

    out = pl.pallas_call(
        featurenn_kernel,
        out_shape=jax.ShapeDtypeStruct((1, bp), jnp.float32),
        grid=(n_tiles,),
        in_specs=[
            pl.BlockSpec((1, bt), lambda i: (0, i)),
            pl.BlockSpec((NUM_UNITS, 8), lambda i: (0, 0)),
            pl.BlockSpec((NUM_UNITS, NUM_UNITS), lambda i: (0, 0)),
            pl.BlockSpec((NUM_UNITS, NUM_UNITS), lambda i: (0, 0)),
        ],
        out_specs=pl.BlockSpec((1, bt), lambda i: (0, i)),
        compiler_params=pltpu.CompilerParams(
            dimension_semantics=("parallel",)),
    )(xt, vecs, w2, w3)

    return out[0, :b][:, None]                   # (batch, 1)


# --------------------------- deterministic params -----------------------------
def init_params(key):
    """Mimic torch.nn.Linear default init: U(-1/sqrt(fan_in), 1/sqrt(fan_in)).

    Weights stored in torch layout (out_f, in_f); biases as (out_f,).
    """
    sizes = [IN_FEATURES] + [NUM_UNITS] * NUM_LAYERS + [1]
    params = []
    for in_f, out_f in zip(sizes[:-1], sizes[1:]):
        key, kw, kb = jax.random.split(key, 3)
        bound = 1.0 / (in_f ** 0.5)
        w = jax.random.uniform(kw, (out_f, in_f), jnp.float32, -bound, bound)
        b = jax.random.uniform(kb, (out_f,), jnp.float32, -bound, bound)
        params.append((w, b))
    return params


# ------------------------------ reference (JAX) --------------------------------
def featurenn_ref(x, params):
    if x.ndim == 1:
        x = x[:, None]
    h = x
    for (w, b) in params[:-1]:
        h = _activation(h @ w.T + b)
    wo, bo = params[-1]
    return h @ wo.T + bo


if __name__ == "__main__":
    key = jax.random.PRNGKey(0)
    kp, kx = jax.random.split(key)

    params = init_params(kp)
    batch = 300                                   # exercises lane padding
    x = jax.random.normal(kx, (batch,), jnp.float32)   # (batch,) like torch docstring

    out = featurenn_forward(x, params)
    jax.block_until_ready(out)

    ref = featurenn_ref(x, params)
    assert out.shape == (batch, 1), out.shape
    assert jnp.allclose(out, ref, atol=1e-5, rtol=1e-4), \
        float(jnp.max(jnp.abs(out - ref)))

    print("KERNEL_OK")
</pallas_src>

<mosaic_0001>
module attributes {stable_mosaic.version = 11 : i64} {
  func.func @featurenn_kernel(%arg0: i32, %arg1: memref<1x384xf32, #tpu.memory_space<vmem>>, %arg2: memref<32x8xf32, #tpu.memory_space<vmem>>, %arg3: memref<32x32xf32, #tpu.memory_space<vmem>>, %arg4: memref<32x32xf32, #tpu.memory_space<vmem>>, %arg5: memref<1x384xf32, #tpu.memory_space<vmem>>) attributes {dimension_semantics = [#tpu.dimension_semantics<parallel>], iteration_bounds = array<i64: 1>, scalar_prefetch = 0 : i64, scratch_operands = 0 : i64, tpu.core_type = #tpu.core_type<tc>, window_params = [{transform_indices = @transform_0, window_bounds = array<i64: 1, 384>}, {pipeline_mode = #tpu.pipeline_mode<synchronous>, transform_indices = @transform_1, window_bounds = array<i64: 32, 8>}, {pipeline_mode = #tpu.pipeline_mode<synchronous>, transform_indices = @transform_2, window_bounds = array<i64: 32, 32>}, {pipeline_mode = #tpu.pipeline_mode<synchronous>, transform_indices = @transform_3, window_bounds = array<i64: 32, 32>}, {transform_indices = @transform_4, window_bounds = array<i64: 1, 384>}]} {
    %c0 = arith.constant 0 : index
    %c0_0 = arith.constant 0 : index
    %0 = vector.load %arg1[%c0, %c0_0] : memref<1x384xf32, #tpu.memory_space<vmem>>, vector<1x384xf32>
    %c0_1 = arith.constant 0 : index
    %c0_2 = arith.constant 0 : index
    %1 = vector.load %arg2[%c0_1, %c0_2] : memref<32x8xf32, #tpu.memory_space<vmem>>, vector<32x8xf32>
    %2 = vector.extract_strided_slice %1 {offsets = [0, 0], sizes = [32, 1], strides = [1, 1]} : vector<32x8xf32> to vector<32x1xf32>
    %3 = vector.extract_strided_slice %1 {offsets = [0, 1], sizes = [32, 1], strides = [1, 1]} : vector<32x8xf32> to vector<32x1xf32>
    %4 = vector.extract_strided_slice %1 {offsets = [0, 2], sizes = [32, 1], strides = [1, 1]} : vector<32x8xf32> to vector<32x1xf32>
    %5 = vector.extract_strided_slice %1 {offsets = [0, 3], sizes = [32, 1], strides = [1, 1]} : vector<32x8xf32> to vector<32x1xf32>
    %6 = vector.extract_strided_slice %1 {offsets = [0, 4], sizes = [32, 1], strides = [1, 1]} : vector<32x8xf32> to vector<32x1xf32>
    %7 = vector.extract_strided_slice %1 {offsets = [0, 5], sizes = [1, 1], strides = [1, 1]} : vector<32x8xf32> to vector<1x1xf32>
    %8 = vector.broadcast %2 : vector<32x1xf32> to vector<32x384xf32>
    %9 = vector.broadcast %0 : vector<1x384xf32> to vector<32x384xf32>
    %10 = arith.mulf %8, %9 : vector<32x384xf32>
    %11 = vector.broadcast %3 : vector<32x1xf32> to vector<32x384xf32>
    %12 = arith.addf %10, %11 : vector<32x384xf32>
    %cst = arith.constant 0.000000e+00 : f32
    %13 = vector.broadcast %cst : f32 to vector<32x384xf32>
    %14 = arith.maximumf %12, %13 : vector<32x384xf32>
    %c0_3 = arith.constant 0 : index
    %c0_4 = arith.constant 0 : index
    %15 = vector.load %arg3[%c0_3, %c0_4] : memref<32x32xf32, #tpu.memory_space<vmem>>, vector<32x32xf32>
    %cst_5 = arith.constant dense<0.000000e+00> : vector<32x384xf32>
    %16 = tpu.matmul %15, %14, %cst_5 {dimension_numbers = #tpu.dot_dimension_numbers<[1], [0], [0], [1], [0, 0, 1, 1], [], []>} : vector<32x32xf32>, vector<32x384xf32>, vector<32x384xf32> -> vector<32x384xf32>
    %17 = vector.broadcast %4 : vector<32x1xf32> to vector<32x384xf32>
    %18 = arith.addf %16, %17 : vector<32x384xf32>
    %cst_6 = arith.constant 0.000000e+00 : f32
    %19 = vector.broadcast %cst_6 : f32 to vector<32x384xf32>
    %20 = arith.maximumf %18, %19 : vector<32x384xf32>
    %c0_7 = arith.constant 0 : index
    %c0_8 = arith.constant 0 : index
    %21 = vector.load %arg4[%c0_7, %c0_8] : memref<32x32xf32, #tpu.memory_space<vmem>>, vector<32x32xf32>
    %cst_9 = arith.constant dense<0.000000e+00> : vector<32x384xf32>
    %22 = tpu.matmul %21, %20, %cst_9 {dimension_numbers = #tpu.dot_dimension_numbers<[1], [0], [0], [1], [0, 0, 1, 1], [], []>} : vector<32x32xf32>, vector<32x384xf32>, vector<32x384xf32> -> vector<32x384xf32>
    %23 = vector.broadcast %5 : vector<32x1xf32> to vector<32x384xf32>
    %24 = arith.addf %22, %23 : vector<32x384xf32>
    %cst_10 = arith.constant 0.000000e+00 : f32
    %25 = vector.broadcast %cst_10 : f32 to vector<32x384xf32>
    %26 = arith.maximumf %24, %25 : vector<32x384xf32>
    %27 = vector.broadcast %6 : vector<32x1xf32> to vector<32x384xf32>
    %28 = arith.mulf %27, %26 : vector<32x384xf32>
    %cst_11 = arith.constant dense<0.000000e+00> : vector<384xf32>
    %29 = vector.multi_reduction <add>, %28, %cst_11 [0] : vector<32x384xf32> to vector<384xf32>
    %30 = vector.shape_cast %29 : vector<384xf32> to vector<1x384xf32>
    %31 = vector.broadcast %7 : vector<1x1xf32> to vector<1x384xf32>
    %32 = arith.addf %30, %31 : vector<1x384xf32>
    %c0_12 = arith.constant 0 : index
    %c0_13 = arith.constant 0 : index
    %33 = vector.load %arg5[%c0_12, %c0_13] : memref<1x384xf32, #tpu.memory_space<vmem>>, vector<1x384xf32>
    tpu.vector_store %arg5[%c0_12, %c0_13], %32 {strides = array<i32>} : memref<1x384xf32, #tpu.memory_space<vmem>>, vector<1x384xf32>,
    return
  }
  func.func @transform_0(%arg0: i32) -> (i32, i32) {
    %c0_i32 = arith.constant 0 : i32
    %c0_i32_0 = arith.constant 0 : i32
    return %c0_i32, %arg0 : i32, i32
  }
  func.func @transform_1(%arg0: i32) -> (i32, i32) {
    %c0_i32 = arith.constant 0 : i32
    %c0_i32_0 = arith.constant 0 : i32
    %c0_i32_1 = arith.constant 0 : i32
    return %c0_i32, %c0_i32_0 : i32, i32
  }
  func.func @transform_2(%arg0: i32) -> (i32, i32) {
    %c0_i32 = arith.constant 0 : i32
    %c0_i32_0 = arith.constant 0 : i32
    %c0_i32_1 = arith.constant 0 : i32
    return %c0_i32, %c0_i32_0 : i32, i32
  }
  func.func @transform_3(%arg0: i32) -> (i32, i32) {
    %c0_i32 = arith.constant 0 : i32
    %c0_i32_0 = arith.constant 0 : i32
    %c0_i32_1 = arith.constant 0 : i32
    return %c0_i32, %c0_i32_0 : i32, i32
  }
  func.func @transform_4(%arg0: i32) -> (i32, i32) {
    %c0_i32 = arith.constant 0 : i32
    %c0_i32_0 = arith.constant 0 : i32
    return %c0_i32, %arg0 : i32, i32
  }
}

</mosaic_0001>

<bundles_post_ra>
// kernel: featurenn_forward.1
= control target key start
LH: loop header
LB: loop body
LE: loop exit
PB: predicated region body
PF: predicated region fallthrough
CT: control target
= control target key end

     0   :  { %v725_v0 = vmov 1   ;;  %v726_v1 = vmov 0   ;;  %vm130_vm0 = vcmask 261120   ;;  %v727_v6 = vmov 0.0   ;;  %s869_s1 = inlined_call_operand.vmem [shape: f32[32,8], index: 1, kind: input, shape index: {}]   ;;  %s870_s2 = inlined_call_operand.vmem [shape: f32[32,32], index: 2, kind: input, shape index: {}]   ;;  %s871_s0 = inlined_call_operand.vmem [shape: f32[1,384], index: 0, kind: input, shape index: {}]   ;;  %s872_s3 = inlined_call_operand.vmem [shape: f32[32,32], index: 3, kind: input, shape index: {}]   ;;  %s873_s4 = inlined_call_operand.vmem [shape: f32[1,384], index: 4, kind: output, shape index: {}]  }
   0x1   :  { %714 = vset.pattern.permute.xlu1 %v725_v0  ;;  %713 = vset.pattern.permute.xlu0 %v726_v1  ;;  %v761_v2 = vld [vmem:[%s869_s1 + $0x18] sm:$0xff]  ;;  %v768_v3 = vld [vmem:[%s869_s1 + $0x10] sm:$0xff]  ;;  %v773_v4 = vld [vmem:[%s869_s1 + $0x8] sm:$0xff]  ;;  %v728_v8 = vmov 2   ;;  %v43_v9 = vlaneseq }
   0x2   :  { %83 = vperm.xlu1 %714, %v761_v2   ;;  %39 = vperm.xlu0 %713, %v761_v2   ;;  %v780_v5 = vld [vmem:[%s869_s1] sm:$0xff]  ;;  %v111_v62 = vld [vmem:[%s870_s2 + $0x8] sm:$0xff]  ;;  %v112_v63 = vld [vmem:[%s870_s2 + $0x10] sm:$0xff] }
   0x3   :  { %207 = vmatprep.mubr.f32.mxu0 %v727_v6  ;;  %v790_v7 = vld [vmem:[%s870_s2] sm:$0xff]  ;;  %v799_v10 = vshrl.u32 %v43_v9, 7  ;;  %vm638_vm1 = vcmp.lt.s32.totalorder %v43_v9, 384 }
   0x4   :  { %685 = vmatprep.mubr.msk.f32.mxu1 %vm130_vm0, %v790_v7  ;;  %v17_v14 = vld [vmem:[%s871_s0] sm:$0x7] }
   0x5   :  { %v45_v11 = vsub.s32 0, %v799_v10  ;;  %v53_v12 = vsub.s32 2, %v799_v10  ;;  %v49_v13 = vsub.s32 1, %v799_v10 }
   0x6   :  { %715 = vset.pattern.permute.xlu1 %v726_v1  ;;  %34 = vperm.xlu0 %713, %v768_v3   ;;  %v831_v1 = vld [vmem:[%s872_s3] sm:$0xff] }
   0x7   :  { %29 = vperm.xlu1 %715, %v773_v4   ;;  %v46_v15 = vrot.slane %v17_v14, %v45_v11  ;;  %v54_v16 = vrot.slane %v17_v14, %v53_v12  ;;  %v50_v17 = vrot.slane %v17_v14, %v49_v13  ;;  %v731_v11 = vmov 5  }
   0xa   :  { %716 = vset.pattern.permute.xlu0 %v725_v0 }
   0xb   :  { %79 = vperm.xlu0 %716, %v768_v3   ;;  %24 = vperm.xlu1 %715, %v780_v5  }
   0xf   :  { %71 = vperm.xlu0 %716, %v780_v5   ;;  %717 = vset.pattern.permute.xlu1 %v725_v0  ;;  %v113_v0 = vld [vmem:[%s870_s2 + $0x18] sm:$0xff] }
  0x10   :  { %75 = vperm.xlu1 %717, %v773_v4  }
  0x13   :  { %719 = vset.pattern.permute.xlu0 %v728_v8 }
  0x14   :  { %718 = vset.pattern.permute.xlu1 %v728_v8  ;;  %123 = vperm.xlu0 %719, %v768_v3   ;;  %v730_v8 = vmov 4  }
  0x15   :  { %127 = vperm.xlu1 %718, %v761_v2  }
  0x19   :  { %119 = vperm.xlu1 %718, %v773_v4  }
  0x1d   :  { %115 = vperm.xlu1 %718, %v780_v5  }
  0x7d   :  { %v84_v18 = vpop.permute.xlu1 %83  ;;  %v40_v19 = vpop.permute.xlu0 %39 }
  0x7e   :  { %v67_v20 = vmul.f32 %v46_v15, %v40_v19  ;;  %v69_v21 = vmul.f32 %v54_v16, %v40_v19  ;;  %v68_v22 = vmul.f32 %v50_v17, %v40_v19 }
  0x80   :  { %v96_v23 = vadd.f32 %v84_v18, %v68_v22  ;;  %v97_v24 = vadd.f32 %v84_v18, %v69_v21  ;;  %v95_v25 = vadd.f32 %v84_v18, %v67_v20 }
  0x81   :  { %v35_v26 = vpop.permute.xlu0 %34 }
  0x82   :  { %v30_v27 = vpop.permute.xlu1 %29  ;;  %v108_v28 = vmax.f32 %v96_v23, 0.0  ;;  %v109_v29 = vmax.f32 %v97_v24, 0.0  ;;  %v107_v30 = vmax.f32 %v95_v25, 0.0  ;;  %v64_v31 = vmul.f32 %v46_v15, %v35_v26 }
  0x83   :  { %v65_v32 = vmul.f32 %v50_v17, %v35_v26  ;;  %v66_v33 = vmul.f32 %v54_v16, %v35_v26  ;;  %v61_v44 = vmul.f32 %v46_v15, %v30_v27  ;;  %v62_v45 = vmul.f32 %v50_v17, %v30_v27 }
  0x84   :  { %167 = vmatprep.subr.mxu0 %v108_v28  ;;  %677 = vmatprep.subr.mxu1 %v109_v29  ;;  %v63_v46 = vmul.f32 %v54_v16, %v30_v27 }
  0x85   :  { %168 = vmatpush1.msra.mxu0 %v107_v30  ;;  %678 = vmatpush3.msra.mxu1 %v109_v29 }
  0x86   :  { %v80_v34 = vpop.permute.xlu0 %79  ;;  %v25_v35 = vpop.permute.xlu1 %24 }
  0x87   :  { %v92_v36 = vadd.f32 %v80_v34, %v64_v31  ;;  %v93_v37 = vadd.f32 %v80_v34, %v65_v32  ;;  %v94_v38 = vadd.f32 %v80_v34, %v66_v33  ;;  %v59_v39 = vmul.f32 %v50_v17, %v25_v35  ;;  %v330_v33 = vld [vmem:[%s872_s3 + $0x8] sm:$0xff] }
  0x88   :  { %v60_v40 = vmul.f32 %v54_v16, %v25_v35  ;;  %v58_v48 = vmul.f32 %v46_v15, %v25_v35 }
  0x89   :  { %v105_v41 = vmax.f32 %v93_v37, 0.0  ;;  %v106_v42 = vmax.f32 %v94_v38, 0.0  ;;  %v104_v43 = vmax.f32 %v92_v36, 0.0  ;;  %v331_v36 = vld [vmem:[%s872_s3 + $0x10] sm:$0xff] }
  0x8a   :  { %v72_v47 = vpop.permute.xlu0 %71 }
  0x8b   :  { %v87_v49 = vadd.f32 %v72_v47, %v59_v39  ;;  %v88_v50 = vadd.f32 %v72_v47, %v60_v40  ;;  %v76_v51 = vpop.permute.xlu1 %75  ;;  %169 = vmatprep.subr.mxu0 %v105_v41  ;;  %679 = vmatprep.subr.mxu1 %v106_v42  ;;  %v86_v55 = vadd.f32 %v72_v47, %v58_v48 }
  0x8c   :  { %v89_v52 = vadd.f32 %v76_v51, %v61_v44  ;;  %v90_v53 = vadd.f32 %v76_v51, %v62_v45  ;;  %v91_v54 = vadd.f32 %v76_v51, %v63_v46  ;;  %170 = vmatpush1.msra.mxu0 %v104_v43  ;;  %680 = vmatpush3.msra.mxu1 %v106_v42  ;;  %v332_v42 = vld [vmem:[%s872_s3 + $0x18] sm:$0xff] }
  0x8d   :  { %v99_v59 = vmax.f32 %v87_v49, 0.0  ;;  %v100_v60 = vmax.f32 %v88_v50, 0.0  ;;  %v98_v61 = vmax.f32 %v86_v55, 0.0 }
  0x8e   :  { %v102_v56 = vmax.f32 %v90_v53, 0.0  ;;  %v103_v57 = vmax.f32 %v91_v54, 0.0  ;;  %v101_v58 = vmax.f32 %v89_v52, 0.0 }
  0x8f   :  { %v124_v18 = vpop.permute.xlu0 %123 }
  0x90   :  { %171 = vmatprep.subr.mxu0 %v102_v56  ;;  %681 = vmatprep.subr.mxu1 %v103_v57  ;;  %v128_v12 = vpop.permute.xlu1 %127 }
  0x91   :  { %172 = vmatpush1.msra.mxu0 %v101_v58  ;;  %682 = vmatpush3.msra.mxu1 %v103_v57 }
  0x92   :  { %173 = vmatprep.subr.mxu0 %v99_v59  ;;  %683 = vmatprep.subr.mxu1 %v100_v60 }
  0x93   :  { %174 = vmatpush1.msra.mxu0 %v98_v61  ;;  %684 = vmatpush3.msra.mxu1 %v100_v60 }
  0x94   :  { %645 = vmatmul.mubr.msk.f32.vlgmr.msra.gmra.mxu0 %vm130_vm0, %v790_v7  ;;  %686 = vmatmul.mubr.msk.f32.vlgmr.msra.gmra.mxu1 %vm130_vm0, %v111_v62  ;;  %v729_v7 = vmov 3   ;;  %v120_v13 = vpop.permute.xlu1 %119 }
  0x95   :  { %213 = vmatprep.mubr.f32.mxu0 %v727_v6  ;;  %688 = vmatprep.mubr.msk.f32.mxu1 %vm130_vm0, %v112_v63 }
  0x96   :  { %721 = vset.pattern.permute.xlu1 %v729_v7  ;;  %720 = vset.pattern.permute.xlu0 %v729_v7 }
  0x97   :  { %338 = vperm.xlu1 %721, %v773_v4   ;;  %334 = vperm.xlu0 %720, %v780_v5  }
  0x98   :  { %646 = vmatmul.mubr.msk.f32.gmra.mxu0 %vm130_vm0, %v111_v62  ;;  %689 = vmatmul.mubr.msk.f32.gmra.mxu1 %vm130_vm0, %v113_v0  ;;  %v116_v21 = vpop.permute.xlu1 %115 }
  0x99   :  { %219 = vmatprep.mubr.f32.mxu0 %v727_v6  ;;  %425 = vmatprep.mubr.f32.mxu1 %v727_v6 }
  0x9b   :  { %342 = vperm.xlu1 %721, %v768_v3   ;;  %346 = vperm.xlu0 %720, %v761_v2  }
  0x9c   :  { %647 = vmatmul.mubr.msk.f32.gmra.mxu0 %vm130_vm0, %v112_v63 }
  0x9d   :  { %225 = vmatprep.mubr.f32.mxu0 %v727_v6 }
  0x9f   :  { %722 = vset.pattern.permute.xlu1 %v730_v8  ;;  %723 = vset.pattern.permute.xlu0 %v730_v8 }
  0xa0   :  { %648 = vmatmul.mubr.msk.f32.gmra.mxu0 %vm130_vm0, %v113_v0  ;;  %548 = vperm.xlu1 %722, %v780_v5  }
  0xa1   :  { %699 = vmatprep.mubr.msk.f32.mxu0 %vm130_vm0, %v831_v1  ;;  %552 = vperm.xlu0 %723, %v773_v4  }
  0xa4   :  { %556 = vperm.xlu1 %722, %v768_v3  }
  0xa5   :  { %724 = vset.pattern.permute.xlu0 %v731_v11 }
  0xa6   :  { %603 = vperm.xlu0 %724, %v780_v5  }
  0xa8   :  { %560 = vperm.xlu1 %722, %v761_v2  }
 0x112   :  { %v339_v51 = vpop.permute.xlu1 %338  ;;  %v335_v52 = vpop.permute.xlu0 %334 }
 0x116   :  { %v343_v53 = vpop.permute.xlu1 %342  ;;  %v347_v54 = vpop.permute.xlu0 %346 }
 0x11b   :  { %v549_v55 = vpop.permute.xlu1 %548 }
 0x11c   :  { %v553_v59 = vpop.permute.xlu0 %552 }
 0x11f   :  { %v557_v62 = vpop.permute.xlu1 %556 }
 0x154   :  { %v209_v14 = vpop.f32.mrf.mxu0  ;;  %v687_v15 = vpop.f32.mrf.mxu1 }
 0x155   :  { %v304_v22 = vadd.f32 %v687_v15, %v120_v13  ;;  %v210_v45 = vadd.f32 %v209_v14, %v116_v21  ;;  %v561_v15 = vpop.permute.xlu1 %560 }
 0x156   :  { %v211_v16 = vpop.f32.mrf.mxu0  ;;  %v298_v17 = vpop.f32.mrf.mxu1 }
 0x157   :  { %v299_v24 = vadd.f32 %v298_v17, %v116_v21  ;;  %v322_v27 = vmax.f32 %v304_v22, 0.0  ;;  %v212_v43 = vadd.f32 %v211_v16, %v116_v21  ;;  %v317_v50 = vmax.f32 %v210_v45, 0.0 }
 0x158   :  { %v215_v19 = vpop.f32.mrf.mxu0  ;;  %v690_v20 = vpop.f32.mrf.mxu1 }
 0x159   :  { %v314_v4 = vadd.f32 %v690_v20, %v128_v12  ;;  %v319_v29 = vmax.f32 %v299_v24, 0.0  ;;  %v216_v40 = vadd.f32 %v215_v19, %v120_v13  ;;  %v318_v49 = vmax.f32 %v212_v43, 0.0 }
 0x15a   :  { %v217_v23 = vpop.f32.mrf.mxu0  ;;  %v308_v3 = vpop.f32.mrf.mxu1 }
 0x15b   :  { %v328_v25 = vmax.f32 %v314_v4, 0.0  ;;  %v309_v26 = vadd.f32 %v308_v3, %v124_v18  ;;  %v218_v38 = vadd.f32 %v217_v23, %v120_v13  ;;  %v320_v48 = vmax.f32 %v216_v40, 0.0 }
 0x15c   :  { %v221_v5 = vpop.f32.mrf.mxu0 }
 0x15d   :  { %v325_v2 = vmax.f32 %v309_v26, 0.0  ;;  %691 = vmatprep.subr.mxu0 %v328_v25  ;;  %v222_v37 = vadd.f32 %v221_v5, %v124_v18  ;;  %v321_v47 = vmax.f32 %v218_v38, 0.0 }
 0x15e   :  { %v223_v28 = vpop.f32.mrf.mxu0  ;;  %692 = vmatpush3.msra.mxu0 %v328_v25 }
 0x15f   :  { %693 = vmatprep.subr.mxu0 %v325_v2  ;;  %v224_v34 = vadd.f32 %v223_v28, %v124_v18  ;;  %v323_v46 = vmax.f32 %v222_v37, 0.0 }
 0x160   :  { %v227_v30 = vpop.f32.mrf.mxu0  ;;  %694 = vmatpush3.msra.mxu0 %v325_v2 }
 0x161   :  { %695 = vmatprep.subr.mxu0 %v322_v27  ;;  %v228_v31 = vadd.f32 %v227_v30, %v128_v12  ;;  %v324_v44 = vmax.f32 %v224_v34, 0.0 }
 0x162   :  { %v229_v32 = vpop.f32.mrf.mxu0  ;;  %696 = vmatpush3.msra.mxu0 %v322_v27 }
 0x163   :  { %v230_v35 = vadd.f32 %v229_v32, %v128_v12  ;;  %697 = vmatprep.subr.mxu0 %v319_v29  ;;  %v326_v41 = vmax.f32 %v228_v31, 0.0 }
 0x164   :  { %698 = vmatpush3.msra.mxu0 %v319_v29 }
 0x165   :  { %v327_v39 = vmax.f32 %v230_v35, 0.0  ;;  %700 = vmatmul.mubr.msk.f32.vlgmr.msra.gmra.mxu0 %vm130_vm0, %v330_v33 }
 0x166   :  { %702 = vmatprep.mubr.msk.f32.mxu0 %vm130_vm0, %v331_v36 }
 0x167   :  { %385 = vmatprep.subr.mxu1 %v327_v39 }
 0x168   :  { %386 = vmatpush1.msra.mxu1 %v326_v41 }
 0x169   :  { %387 = vmatprep.subr.mxu1 %v324_v44  ;;  %703 = vmatmul.mubr.msk.f32.gmra.mxu0 %vm130_vm0, %v332_v42 }
 0x16a   :  { %388 = vmatpush1.msra.mxu1 %v323_v46 }
 0x16b   :  { %389 = vmatprep.subr.mxu1 %v321_v47 }
 0x16c   :  { %390 = vmatpush1.msra.mxu1 %v320_v48 }
 0x16d   :  { %391 = vmatprep.subr.mxu1 %v318_v49 }
 0x16e   :  { %392 = vmatpush1.msra.mxu1 %v317_v50 }
 0x16f   :  { %653 = vmatmul.mubr.msk.f32.vlgmr.msra.gmra.mxu1 %vm130_vm0, %v831_v1 }
 0x170   :  { %431 = vmatprep.mubr.f32.mxu1 %v727_v6 }
 0x173   :  { %654 = vmatmul.mubr.msk.f32.gmra.mxu1 %vm130_vm0, %v330_v33 }
 0x174   :  { %437 = vmatprep.mubr.f32.mxu1 %v727_v6 }
 0x177   :  { %655 = vmatmul.mubr.msk.f32.gmra.mxu1 %vm130_vm0, %v331_v36 }
 0x178   :  { %443 = vmatprep.mubr.f32.mxu1 %v727_v6 }
 0x17b   :  { %656 = vmatmul.mubr.msk.f32.gmra.mxu1 %vm130_vm0, %v332_v42 }
 0x225   :  { %v701_v56 = vpop.f32.mrf.mxu0 }
 0x226   :  { %v522_v57 = vadd.f32 %v701_v56, %v339_v51 }
 0x227   :  { %v516_v58 = vpop.f32.mrf.mxu0 }
 0x228   :  { %v540_v60 = vmax.f32 %v522_v57, 0.0  ;;  %v517_v61 = vadd.f32 %v516_v58, %v335_v52 }
 0x229   :  { %v704_v63 = vpop.f32.mrf.mxu0 }
 0x22a   :  { %v537_v0 = vmax.f32 %v517_v61, 0.0  ;;  %v532_v1 = vadd.f32 %v704_v63, %v347_v54  ;;  %v568_v7 = vmul.f32 %v553_v59, %v540_v60 }
 0x22b   :  { %v526_v8 = vpop.f32.mrf.mxu0 }
 0x22c   :  { %v565_v6 = vmul.f32 %v549_v55, %v537_v0  ;;  %v527_v11 = vadd.f32 %v526_v8, %v343_v53  ;;  %v546_v12 = vmax.f32 %v532_v1, 0.0  ;;  %v732_v1 = vmov 1966171168  }
 0x22e   :  { %v543_v13 = vmax.f32 %v527_v11, 0.0  ;;  %v593_v14 = vadd.f32 %v568_v7, %v565_v6  ;;  %v574_v18 = vmul.f32 %v561_v15, %v546_v12  ;;  %v614_v7 = vunpack.c.l.s4 %v732_v1 }
 0x22f   :  { %v427_v16 = vpop.f32.mrf.mxu1 }
 0x230   :  { %v571_v17 = vmul.f32 %v557_v62, %v543_v13  ;;  %v428_v21 = vadd.f32 %v427_v16, %v335_v52  ;;  %v615_v12 = vunpack.c.0.s8 %v614_v7 }
 0x231   :  { %v429_v19 = vpop.f32.mrf.mxu1 }
 0x232   :  { %v594_v20 = vadd.f32 %v593_v14, %v571_v17  ;;  %v430_v3 = vadd.f32 %v429_v19, %v335_v52  ;;  %v535_v5 = vmax.f32 %v428_v21, 0.0 }
 0x233   :  { %v433_v22 = vpop.f32.mrf.mxu1 }
 0x234   :  { %v434_v4 = vadd.f32 %v433_v22, %v339_v51  ;;  %v595_v23 = vadd.f32 %v594_v20, %v574_v18  ;;  %v536_v30 = vmax.f32 %v430_v3, 0.0  ;;  %v563_v35 = vmul.f32 %v549_v55, %v535_v5 }
 0x235   :  { %v435_v24 = vpop.f32.mrf.mxu1  ;;  %v618_v18 = vsub.s32 %v615_v12, %v799_v10 }
 0x236   :  { %v538_v25 = vmax.f32 %v434_v4, 0.0  ;;  %v436_v26 = vadd.f32 %v435_v24, %v339_v51  ;;  %v596_v29 = vrot.slane %v595_v23, 4  ;;  %v564_v42 = vmul.f32 %v549_v55, %v536_v30 }
 0x237   :  { %v439_v27 = vpop.f32.mrf.mxu1 }
 0x238   :  { %v539_v2 = vmax.f32 %v436_v26, 0.0  ;;  %v440_v28 = vadd.f32 %v439_v27, %v343_v53  ;;  %v566_v32 = vmul.f32 %v553_v59, %v538_v25  ;;  %v597_v41 = vadd.f32 %v596_v29, %v595_v23 }
 0x239   :  { %v441_v31 = vpop.f32.mrf.mxu1 }
 0x23a   :  { %v541_v33 = vmax.f32 %v440_v28, 0.0  ;;  %v442_v34 = vadd.f32 %v441_v31, %v343_v53  ;;  %v567_v37 = vmul.f32 %v553_v59, %v539_v2  ;;  %v575_v44 = vadd.f32 %v566_v32, %v563_v35 }
 0x23b   :  { %v445_v36 = vpop.f32.mrf.mxu1  ;;  %v598_v57 = vrot.slane %v597_v41, 2 }
 0x23c   :  { %v569_v38 = vmul.f32 %v557_v62, %v541_v33  ;;  %v542_v39 = vmax.f32 %v442_v34, 0.0  ;;  %v446_v40 = vadd.f32 %v445_v36, %v347_v54  ;;  %v584_v48 = vadd.f32 %v567_v37, %v564_v42 }
 0x23d   :  { %v447_v43 = vpop.f32.mrf.mxu1  ;;  %v599_v63 = vadd.f32 %v598_v57, %v597_v41 }
 0x23e   :  { %v570_v45 = vmul.f32 %v557_v62, %v542_v39  ;;  %v544_v46 = vmax.f32 %v446_v40, 0.0  ;;  %v448_v47 = vadd.f32 %v447_v43, %v347_v54  ;;  %v576_v49 = vadd.f32 %v575_v44, %v569_v38 }
 0x23f   :  { %v600_v54 = vrot.slane %v599_v63, 1 }
 0x240   :  { %v572_v50 = vmul.f32 %v561_v15, %v544_v46  ;;  %v545_v51 = vmax.f32 %v448_v47, 0.0  ;;  %v585_v52 = vadd.f32 %v584_v48, %v570_v45 }
 0x241   :  { %v601_v16 = vadd.f32 %v600_v54, %v599_v63 }
 0x242   :  { %v577_v56 = vadd.f32 %v576_v49, %v572_v50  ;;  %v573_v53 = vmul.f32 %v561_v15, %v545_v51  ;;  %v604_v15 = vpop.permute.xlu0 %603 }
 0x243   :  { %v608_v21 = vadd.f32 %v604_v15, %v601_v16 }
 0x244   :  { %v578_v58 = vrot.slane %v577_v56, 4  ;;  %v586_v59 = vadd.f32 %v585_v52, %v573_v53 }
 0x245   :  { %v626_v23 = vrot.slane %v608_v21, %v618_v18 }
 0x246   :  { %v579_v60 = vadd.f32 %v578_v58, %v577_v56  ;;  %v587_v61 = vrot.slane %v586_v59, 4 }
 0x248   :  { %v588_v0 = vadd.f32 %v587_v61, %v586_v59  ;;  %v580_v55 = vrot.slane %v579_v60, 2 }
 0x24a   :  { %v581_v62 = vadd.f32 %v580_v55, %v579_v60  ;;  %v589_v8 = vrot.slane %v588_v0, 2 }
 0x24c   :  { %v582_v6 = vrot.slane %v581_v62, 1  ;;  %v590_v11 = vadd.f32 %v589_v8, %v588_v0 }
 0x24e   :  { %v583_v13 = vadd.f32 %v582_v6, %v581_v62  ;;  %v591_v14 = vrot.slane %v590_v11, 1 }
 0x250   :  { %v592_v17 = vadd.f32 %v591_v14, %v590_v11  ;;  %v606_v19 = vadd.f32 %v604_v15, %v583_v13 }
 0x252   :  { %v607_v20 = vadd.f32 %v604_v15, %v592_v17 }
 0x254   :  { %v612_v22 = vcombine.low %v606_v19, %v607_v20 }
 0x256   :  { %v619_v4 = vrot.slane %v612_v22, %v618_v18 }
 0x258   :  { %v627_v3 = vcombine.low %v619_v4, %v626_v23 }
 0x25a   :  { %v634_v24 = vrot.slane %v627_v3, %v618_v18 }
 0x25c   :  { %640 = vst.msk [vmem:[%s873_s4] sm:$0x7] %vm638_vm1, %v634_v24 }

</bundles_post_ra>
